<compile_context>
chip_gen: v7x
topology: tpu7x:2x2x1
jax: 0.10.0
libtpu: 0.0.40
codegen_flags: <defaults>
</compile_context>

<pallas_src>
import functools

import jax
import jax.numpy as jnp
from jax import lax
from jax.experimental import pallas as pl
from jax.experimental.pallas import tpu as pltpu


# 3x3 tap offsets, t = ky*3 + kx with (dy, dx) = (ky-1, kx-1).
_TAP_OFFSETS = tuple((dy, dx) for dy in (-1, 0, 1) for dx in (-1, 0, 1))


def _round_up(x, m):
    return ((x + m - 1) // m) * m


# ----------------------------------------------------------------------------
# Fused kernel: one grid step = one batch element.
# ----------------------------------------------------------------------------
def _up_fused_kernel(x1_ref, x2_ref, ut_ref, mask_ref,
                     w1_ref, b1_ref, w2_ref, b2_ref,
                     o_ref, cat_ref, im1_ref, im2_ref,
                     *, W, HW, C1, C2, CP1, CP2):
    # x1_ref:  (1, C1, H1*W1)  low-res input, flattened spatial on lanes
    # x2_ref:  (1, C2, H2*W2)  skip connection
    # ut_ref:  (H1*W1, HW)     constant bilinear-x2(align_corners)+pad matrix
    # mask_ref:(9, HW)         1.0 where a conv tap is in-bounds else 0.0
    # w1_ref:  (CP2, 9*CP1)    conv1 taps packed (BN1 scale folded, zero-padded)
    # b1_ref:  (CP2, 1)        folded BN1 shift (zero-padded rows)
    # w2_ref:  (Co, 9*CP2)     conv2 taps packed (BN2 scale folded, zero-padded)
    # b2_ref:  (Co, 1)         folded BN2 shift
    # o_ref:   (1, Co, HW)
    # cat_ref: (CP1, HW)       scratch: concat(x2, up(x1)) with padded rows = 0
    # im1_ref: (9*CP1, HW)     scratch: im2col of cat (per-tap blocks)
    # im2_ref: (9*CP2, HW)     scratch: im2col of conv1 activation
    f32 = jnp.float32

    def cdot(a, b):  # (M, K) x (K, HW) -> (M, HW), f32 accumulation on the MXU
        return lax.dot_general(a, b, dimension_numbers=(((1,), (0,)), ((), ())),
                               preferred_element_type=f32)

    # Upsample + centre zero-pad of x1 as a single constant matmul.
    x1u = cdot(x1_ref[0].astype(f32), ut_ref[...])            # (C1, HW)

    # Build concat([x2, up(x1)]) in a channel-padded VMEM buffer (no HBM concat).
    cat_ref[0:C2, :] = x2_ref[0].astype(f32)
    cat_ref[C2:C2 + C1, :] = x1u
    if CP1 > C1 + C2:  # static; keep padded rows zero (zero weight cols anyway)
        cat_ref[C1 + C2:, :] = jnp.zeros((CP1 - C1 - C2, HW), f32)
    cat = cat_ref[...]                                        # (CP1, HW)

    masks = mask_ref[...]                                     # (9, HW)

    def rolled_masked(x, t, dy, dx):
        # result[c, p] = x[c, p + dy*W + dx] for in-bounds taps, else 0.
        s = dy * W + dx
        if s == 0:
            return x                                          # centre tap: always valid
        return pltpu.roll(x, (-s) % HW, axis=1) * masks[t:t + 1, :]

    # im2col for conv1: 9 sublane-aligned blocks, then ONE MXU matmul (K=9*CP1).
    for t, (dy, dx) in enumerate(_TAP_OFFSETS):
        im1_ref[t * CP1:(t + 1) * CP1, :] = rolled_masked(cat, t, dy, dx)
    h = jnp.maximum(cdot(w1_ref[...], im1_ref[...]) + b1_ref[...], 0.0)  # (CP2, HW)
    # padded rows of h are relu(0 + 0) = 0, so im2 blocks below stay clean.

    # im2col for conv2 over the in-VMEM intermediate h, then ONE matmul (K=9*CP2).
    for t, (dy, dx) in enumerate(_TAP_OFFSETS):
        im2_ref[t * CP2:(t + 1) * CP2, :] = rolled_masked(h, t, dy, dx)
    y = jnp.maximum(cdot(w2_ref[...], im2_ref[...]) + b2_ref[...], 0.0)  # (Co, HW)

    o_ref[0] = y.astype(o_ref.dtype)                          # lane-dense store (HW mult of 128)


# ----------------------------------------------------------------------------
# One-time parameter folding (host side, not per call).
# ----------------------------------------------------------------------------
def _linear_interp_matrix(in_size, out_size):
    """(out_size, in_size) 1-D bilinear interp matrix, align_corners=True."""
    if out_size > 1 and in_size > 1:
        src = jnp.arange(out_size, dtype=jnp.float32) * ((in_size - 1) / (out_size - 1))
    else:
        src = jnp.zeros((out_size,), jnp.float32)
    i0 = jnp.clip(jnp.floor(src).astype(jnp.int32), 0, in_size - 1)
    i1 = jnp.minimum(i0 + 1, in_size - 1)
    w = src - i0.astype(jnp.float32)
    rows = jnp.arange(out_size)
    m = jnp.zeros((out_size, in_size), jnp.float32)
    m = m.at[rows, i0].add(1.0 - w)
    m = m.at[rows, i1].add(w)
    return m


def _upsample_pad_matrix(h1, w1, h2, w2):
    """(H2*W2, H1*W1): bilinear x2 upsample (align_corners=True) then F.pad to (H2, W2)."""
    hu, wu = 2 * h1, 2 * w1
    uy = _linear_interp_matrix(h1, hu)
    ux = _linear_interp_matrix(w1, wu)
    dy, dx = h2 - hu, w2 - wu                       # diffY, diffX (>= 0 in UNet)
    uy = jnp.zeros((h2, h1), jnp.float32).at[dy // 2:dy // 2 + hu, :].set(uy)
    ux = jnp.zeros((w2, w1), jnp.float32).at[dx // 2:dx // 2 + wu, :].set(ux)
    return jnp.kron(uy, ux)


def _conv_masks(h, w):
    """(9, H*W) validity masks for the 3x3 taps of a padding=1 conv (flat layout)."""
    yy = jnp.arange(h)[:, None]
    xx = jnp.arange(w)[None, :]
    ms = []
    for dy, dx in _TAP_OFFSETS:
        valid = (yy + dy >= 0) & (yy + dy < h) & (xx + dx >= 0) & (xx + dx < w)
        ms.append(valid.reshape(-1))
    return jnp.stack(ms).astype(jnp.float32)


def _fold_bn(gamma, beta, mean, var, eps=1e-5):
    scale = gamma / jnp.sqrt(var + eps)
    return scale, beta - mean * scale


def prepare_up_params(w1_oihw, bn1, w2_oihw, bn2, x1_hw, x2_hw, c_skip, eps=1e-5):
    """Fold BN into conv weights, pack per-tap weights into 8-sublane-aligned
    im2col columns, and build the constant upsample matrix + tap masks."""
    h1, w1 = x1_hw
    h2, w2 = x2_hw
    scale1, bias1 = _fold_bn(*bn1, eps)
    scale2, bias2 = _fold_bn(*bn2, eps)
    cm, cin = w1_oihw.shape[:2]                      # cin = C2 + C1 (x2 first, then x1)
    co = w2_oihw.shape[0]
    cp1 = _round_up(cin, 8)                          # padded concat channel count
    cp2 = _round_up(cm, 8)                           # padded mid channel count

    w1s = w1_oihw * scale1[:, None, None, None]      # BN1 scale folded into conv1
    w2s = w2_oihw * scale2[:, None, None, None]      # BN2 scale folded into conv2
    w1_t = jnp.transpose(w1s, (2, 3, 0, 1)).reshape(9, cm, cin)   # (tap, Cout, Cin)
    w2_t = jnp.transpose(w2s, (2, 3, 0, 1)).reshape(9, co, cm)

    w1p = jnp.zeros((cp2, 9 * cp1), jnp.float32)     # packed (padded slots = 0)
    w2p = jnp.zeros((co, 9 * cp2), jnp.float32)
    for t in range(9):
        w1p = w1p.at[:cm, t * cp1:t * cp1 + cin].set(w1_t[t])
        w2p = w2p.at[:, t * cp2:t * cp2 + cm].set(w2_t[t])
    b1p = jnp.zeros((cp2, 1), jnp.float32).at[:cm, 0].set(bias1)

    return dict(
        w1=w1p, b1=b1p,
        w2=w2p, b2=bias2.reshape(co, 1).astype(jnp.float32),
        ut=jnp.transpose(_upsample_pad_matrix(h1, w1, h2, w2)),   # (H1*W1, H2*W2)
        masks=_conv_masks(h2, w2),
        meta=dict(c_skip=c_skip, cm=cm, co=co, cp1=cp1, cp2=cp2),
    )


# ----------------------------------------------------------------------------
# Forward: NCHW in, NCHW out.  Only free reshapes outside the kernel.
# ----------------------------------------------------------------------------
def up_forward(x1_nchw, x2_nchw, params):
    n, c1, h1, w1 = x1_nchw.shape
    _, c2, h2, w2 = x2_nchw.shape
    hw = h2 * w2
    meta = params["meta"]
    cp1, cp2, co = meta["cp1"], meta["cp2"], meta["co"]

    x1f = x1_nchw.reshape(n, c1, h1 * w1)            # channel-on-sublane, spatial-on-lane
    x2f = x2_nchw.reshape(n, c2, hw)

    kernel = functools.partial(_up_fused_kernel, W=w2, HW=hw,
                               C1=c1, C2=c2, CP1=cp1, CP2=cp2)
    out = pl.pallas_call(
        kernel,
        out_shape=jax.ShapeDtypeStruct((n, co, hw), x2_nchw.dtype),
        # Batch on the grid: feeds v7x's 2nd TensorCore; ~0.35us extra on 1-TC chips.
        grid=(n,),
        in_specs=[
            pl.BlockSpec((1, c1, h1 * w1), lambda i: (i, 0, 0)),
            pl.BlockSpec((1, c2, hw), lambda i: (i, 0, 0)),
            pl.BlockSpec((h1 * w1, hw), lambda i: (0, 0)),
            pl.BlockSpec((9, hw), lambda i: (0, 0)),
            pl.BlockSpec((cp2, 9 * cp1), lambda i: (0, 0)),
            pl.BlockSpec((cp2, 1), lambda i: (0, 0)),
            pl.BlockSpec((co, 9 * cp2), lambda i: (0, 0)),
            pl.BlockSpec((co, 1), lambda i: (0, 0)),
        ],
        out_specs=pl.BlockSpec((1, co, hw), lambda i: (i, 0, 0)),
        scratch_shapes=[
            pltpu.VMEM((cp1, hw), jnp.float32),        # concat buffer
            pltpu.VMEM((9 * cp1, hw), jnp.float32),    # im2col for conv1
            pltpu.VMEM((9 * cp2, hw), jnp.float32),    # im2col for conv2
        ],
        compiler_params=pltpu.CompilerParams(dimension_semantics=("parallel",)),
    )(x1f, x2f, params["ut"], params["masks"],
      params["w1"], params["b1"], params["w2"], params["b2"])
    return out.reshape(n, co, h2, w2)


# ----------------------------------------------------------------------------
# Pure-JAX reference (mirrors the PyTorch module structure, eval-mode BN).
# ----------------------------------------------------------------------------
def _ref_bilinear_upsample_x2(x):
    """x: (N, H, W, C) -> (N, 2H, 2W, C), bilinear, align_corners=True."""
    _, h, w, _ = x.shape
    ho, wo = 2 * h, 2 * w

    def idx_w(in_size, out_size):
        if out_size > 1 and in_size > 1:
            src = jnp.arange(out_size, dtype=jnp.float32) * ((in_size - 1) / (out_size - 1))
        else:
            src = jnp.zeros((out_size,), jnp.float32)
        i0 = jnp.minimum(jnp.floor(src).astype(jnp.int32), in_size - 1)
        i1 = jnp.minimum(i0 + 1, in_size - 1)
        return i0, i1, src - i0.astype(jnp.float32)

    y0, y1, wy = idx_w(h, ho)
    x0, x1, wx = idx_w(w, wo)
    rows = (jnp.take(x, y0, axis=1) * (1 - wy)[None, :, None, None]
            + jnp.take(x, y1, axis=1) * wy[None, :, None, None])
    return (jnp.take(rows, x0, axis=2) * (1 - wx)[None, None, :, None]
            + jnp.take(rows, x1, axis=2) * wx[None, None, :, None])


def _ref_conv_bn_relu(x_nhwc, w_oihw, bn, eps=1e-5):
    gamma, beta, mean, var = bn
    scale = gamma / jnp.sqrt(var + eps)
    bias = beta - mean * scale
    w_hwio = jnp.transpose(w_oihw, (2, 3, 1, 0))
    y = lax.conv_general_dilated(x_nhwc, w_hwio, (1, 1), "SAME",
                                 dimension_numbers=("NHWC", "HWIO", "NHWC"))
    return jnp.maximum(y * scale + bias, 0.0)


def _ref_up_forward(x1_nchw, x2_nchw, w1_oihw, bn1, w2_oihw, bn2):
    x1 = jnp.transpose(x1_nchw, (0, 2, 3, 1))
    x2 = jnp.transpose(x2_nchw, (0, 2, 3, 1))
    x1 = _ref_bilinear_upsample_x2(x1)
    dy = x2.shape[1] - x1.shape[1]
    dx = x2.shape[2] - x1.shape[2]
    x1 = jnp.pad(x1, ((0, 0), (dy // 2, dy - dy // 2), (dx // 2, dx - dx // 2), (0, 0)))
    x = jnp.concatenate([x2, x1], axis=-1)
    h = _ref_conv_bn_relu(x, w1_oihw, bn1)
    h = _ref_conv_bn_relu(h, w2_oihw, bn2)
    return jnp.transpose(h, (0, 3, 1, 2))


if __name__ == "__main__":
    key = jax.random.PRNGKey(0)
    ks = jax.random.split(key, 12)

    # x1 is the low-res feature map, x2 the skip connection.
    N = 2
    C1, H1, W1 = 4, 8, 8          # x1: (2, 4, 8, 8)
    C2, H2, W2 = 4, 16, 16        # x2: (2, 4, 16, 16)
    in_ch = C1 + C2               # 8  (channels after concat)
    out_ch = 8                    # Up(in_channels=8, out_channels=8, bilinear=True)
    mid = out_ch // 2             # DoubleConv(8, 4): mid = out = 4
    oc = out_ch // 2

    x1 = jax.random.normal(ks[0], (N, C1, H1, W1), jnp.float32)
    x2 = jax.random.normal(ks[1], (N, C2, H2, W2), jnp.float32)

    # Conv weights in PyTorch OIHW layout (no bias).
    w1_oihw = jax.random.normal(ks[2], (mid, in_ch, 3, 3), jnp.float32) * 0.1
    w2_oihw = jax.random.normal(ks[3], (oc, mid, 3, 3), jnp.float32) * 0.1

    # BatchNorm parameters + running stats (eval mode).
    # TODO(synk): training-mode BatchNorm (batch statistics / running-stat updates)
    # is not implemented; eval-mode running stats are folded into the conv weights.
    g1 = jax.random.uniform(ks[4], (mid,), minval=0.5, maxval=1.5)
    b1 = jax.random.normal(ks[5], (mid,)) * 0.1
    m1 = jax.random.normal(ks[6], (mid,)) * 0.1
    v1 = jax.random.uniform(ks[7], (mid,), minval=0.5, maxval=1.5)
    g2 = jax.random.uniform(ks[8], (oc,), minval=0.5, maxval=1.5)
    b2 = jax.random.normal(ks[9], (oc,)) * 0.1
    m2 = jax.random.normal(ks[10], (oc,)) * 0.1
    v2 = jax.random.uniform(ks[11], (oc,), minval=0.5, maxval=1.5)

    params = prepare_up_params(w1_oihw, (g1, b1, m1, v1), w2_oihw, (g2, b2, m2, v2),
                               (H1, W1), (H2, W2), c_skip=C2)

    out = jax.block_until_ready(up_forward(x1, x2, params))
    assert out.shape == (N, oc, H2, W2), out.shape

    ref = _ref_up_forward(x1, x2, w1_oihw, (g1, b1, m1, v1), w2_oihw, (g2, b2, m2, v2))
    err = float(jnp.max(jnp.abs(out - ref)))
    assert jnp.allclose(out, ref, rtol=1e-4, atol=1e-4), err

    print("KERNEL_OK")
</pallas_src>

<mosaic_0001>
module attributes {stable_mosaic.version = 11 : i64} {
  func.func @_up_fused_kernel(%arg0: i32, %arg1: memref<1x4x64xf32, #tpu.memory_space<vmem>>, %arg2: memref<1x4x256xf32, #tpu.memory_space<vmem>>, %arg3: memref<64x256xf32, #tpu.memory_space<vmem>>, %arg4: memref<9x256xf32, #tpu.memory_space<vmem>>, %arg5: memref<8x72xf32, #tpu.memory_space<vmem>>, %arg6: memref<8x1xf32, #tpu.memory_space<vmem>>, %arg7: memref<4x72xf32, #tpu.memory_space<vmem>>, %arg8: memref<4x1xf32, #tpu.memory_space<vmem>>, %arg9: memref<1x4x256xf32, #tpu.memory_space<vmem>>, %arg10: memref<8x256xf32, #tpu.memory_space<vmem>>, %arg11: memref<72x256xf32, #tpu.memory_space<vmem>>, %arg12: memref<72x256xf32, #tpu.memory_space<vmem>>) attributes {dimension_semantics = [#tpu.dimension_semantics<parallel>], iteration_bounds = array<i64: 2>, scalar_prefetch = 0 : i64, scratch_operands = 3 : i64, tpu.core_type = #tpu.core_type<tc>, window_params = [{transform_indices = @transform_0, window_bounds = array<i64: 1, 4, 64>}, {transform_indices = @transform_1, window_bounds = array<i64: 1, 4, 256>}, {pipeline_mode = #tpu.pipeline_mode<synchronous>, transform_indices = @transform_2, window_bounds = array<i64: 64, 256>}, {pipeline_mode = #tpu.pipeline_mode<synchronous>, transform_indices = @transform_3, window_bounds = array<i64: 9, 256>}, {pipeline_mode = #tpu.pipeline_mode<synchronous>, transform_indices = @transform_4, window_bounds = array<i64: 8, 72>}, {pipeline_mode = #tpu.pipeline_mode<synchronous>, transform_indices = @transform_5, window_bounds = array<i64: 8, 1>}, {pipeline_mode = #tpu.pipeline_mode<synchronous>, transform_indices = @transform_6, window_bounds = array<i64: 4, 72>}, {pipeline_mode = #tpu.pipeline_mode<synchronous>, transform_indices = @transform_7, window_bounds = array<i64: 4, 1>}, {transform_indices = @transform_8, window_bounds = array<i64: 1, 4, 256>}]} {
    %c0 = arith.constant 0 : index
    %c0_0 = arith.constant 0 : index
    %c0_1 = arith.constant 0 : index
    %0 = vector.load %arg1[%c0, %c0_0, %c0_1] : memref<1x4x64xf32, #tpu.memory_space<vmem>>, vector<1x4x64xf32>
    %1 = vector.shape_cast %0 : vector<1x4x64xf32> to vector<4x64xf32>
    %c0_2 = arith.constant 0 : index
    %c0_3 = arith.constant 0 : index
    %2 = vector.load %arg3[%c0_2, %c0_3] : memref<64x256xf32, #tpu.memory_space<vmem>>, vector<64x256xf32>
    %cst = arith.constant dense<0.000000e+00> : vector<4x256xf32>
    %3 = tpu.matmul %1, %2, %cst {dimension_numbers = #tpu.dot_dimension_numbers<[1], [0], [0], [1], [0, 0, 1, 1], [], []>} : vector<4x64xf32>, vector<64x256xf32>, vector<4x256xf32> -> vector<4x256xf32>
    %c0_4 = arith.constant 0 : index
    %c0_5 = arith.constant 0 : index
    %c0_6 = arith.constant 0 : index
    %4 = vector.load %arg2[%c0_4, %c0_5, %c0_6] : memref<1x4x256xf32, #tpu.memory_space<vmem>>, vector<1x4x256xf32>
    %5 = vector.shape_cast %4 : vector<1x4x256xf32> to vector<4x256xf32>
    %c0_7 = arith.constant 0 : index
    %c0_8 = arith.constant 0 : index
    %6 = vector.load %arg10[%c0_7, %c0_8] : memref<8x256xf32, #tpu.memory_space<vmem>>, vector<4x256xf32>
    tpu.vector_store %arg10[%c0_7, %c0_8], %5 {strides = array<i32>} : memref<8x256xf32, #tpu.memory_space<vmem>>, vector<4x256xf32>,
    %c4 = arith.constant 4 : index
    %c0_9 = arith.constant 0 : index
    %7 = vector.load %arg10[%c4, %c0_9] : memref<8x256xf32, #tpu.memory_space<vmem>>, vector<4x256xf32>
    tpu.vector_store %arg10[%c4, %c0_9], %3 {strides = array<i32>} : memref<8x256xf32, #tpu.memory_space<vmem>>, vector<4x256xf32>,
    %c0_10 = arith.constant 0 : index
    %c0_11 = arith.constant 0 : index
    %8 = vector.load %arg10[%c0_10, %c0_11] : memref<8x256xf32, #tpu.memory_space<vmem>>, vector<8x256xf32>
    %c0_12 = arith.constant 0 : index
    %c0_13 = arith.constant 0 : index
    %9 = vector.load %arg4[%c0_12, %c0_13] : memref<9x256xf32, #tpu.memory_space<vmem>>, vector<9x256xf32>
    %c17_i32 = arith.constant 17 : i32
    %10 = tpu.dynamic_rotate %8 by %c17_i32 dim 1 : vector<8x256xf32>, i32 -> vector<8x256xf32>
    %11 = vector.extract_strided_slice %9 {offsets = [0, 0], sizes = [1, 256], strides = [1, 1]} : vector<9x256xf32> to vector<1x256xf32>
    %12 = vector.broadcast %11 : vector<1x256xf32> to vector<8x256xf32>
    %13 = arith.mulf %10, %12 : vector<8x256xf32>
    %c0_14 = arith.constant 0 : index
    %c0_15 = arith.constant 0 : index
    %14 = vector.load %arg11[%c0_14, %c0_15] : memref<72x256xf32, #tpu.memory_space<vmem>>, vector<8x256xf32>
    tpu.vector_store %arg11[%c0_14, %c0_15], %13 {strides = array<i32>} : memref<72x256xf32, #tpu.memory_space<vmem>>, vector<8x256xf32>,
    %c16_i32 = arith.constant 16 : i32
    %15 = tpu.dynamic_rotate %8 by %c16_i32 dim 1 : vector<8x256xf32>, i32 -> vector<8x256xf32>
    %16 = vector.extract_strided_slice %9 {offsets = [1, 0], sizes = [1, 256], strides = [1, 1]} : vector<9x256xf32> to vector<1x256xf32>
    %17 = vector.broadcast %16 : vector<1x256xf32> to vector<8x256xf32>
    %18 = arith.mulf %15, %17 : vector<8x256xf32>
    %c8 = arith.constant 8 : index
    %c0_16 = arith.constant 0 : index
    %19 = vector.load %arg11[%c8, %c0_16] : memref<72x256xf32, #tpu.memory_space<vmem>>, vector<8x256xf32>
    tpu.vector_store %arg11[%c8, %c0_16], %18 {strides = array<i32>} : memref<72x256xf32, #tpu.memory_space<vmem>>, vector<8x256xf32>,
    %c15_i32 = arith.constant 15 : i32
    %20 = tpu.dynamic_rotate %8 by %c15_i32 dim 1 : vector<8x256xf32>, i32 -> vector<8x256xf32>
    %21 = vector.extract_strided_slice %9 {offsets = [2, 0], sizes = [1, 256], strides = [1, 1]} : vector<9x256xf32> to vector<1x256xf32>
    %22 = vector.broadcast %21 : vector<1x256xf32> to vector<8x256xf32>
    %23 = arith.mulf %20, %22 : vector<8x256xf32>
    %c16 = arith.constant 16 : index
    %c0_17 = arith.constant 0 : index
    %24 = vector.load %arg11[%c16, %c0_17] : memref<72x256xf32, #tpu.memory_space<vmem>>, vector<8x256xf32>
    tpu.vector_store %arg11[%c16, %c0_17], %23 {strides = array<i32>} : memref<72x256xf32, #tpu.memory_space<vmem>>, vector<8x256xf32>,
    %c1_i32 = arith.constant 1 : i32
    %25 = tpu.dynamic_rotate %8 by %c1_i32 dim 1 : vector<8x256xf32>, i32 -> vector<8x256xf32>
    %26 = vector.extract_strided_slice %9 {offsets = [3, 0], sizes = [1, 256], strides = [1, 1]} : vector<9x256xf32> to vector<1x256xf32>
    %27 = vector.broadcast %26 : vector<1x256xf32> to vector<8x256xf32>
    %28 = arith.mulf %25, %27 : vector<8x256xf32>
    %c24 = arith.constant 24 : index
    %c0_18 = arith.constant 0 : index
    %29 = vector.load %arg11[%c24, %c0_18] : memref<72x256xf32, #tpu.memory_space<vmem>>, vector<8x256xf32>
    tpu.vector_store %arg11[%c24, %c0_18], %28 {strides = array<i32>} : memref<72x256xf32, #tpu.memory_space<vmem>>, vector<8x256xf32>,
    %c32 = arith.constant 32 : index
    %c0_19 = arith.constant 0 : index
    %30 = vector.load %arg11[%c32, %c0_19] : memref<72x256xf32, #tpu.memory_space<vmem>>, vector<8x256xf32>
    tpu.vector_store %arg11[%c32, %c0_19], %8 {strides = array<i32>} : memref<72x256xf32, #tpu.memory_space<vmem>>, vector<8x256xf32>,
    %c255_i32 = arith.constant 255 : i32
    %31 = tpu.dynamic_rotate %8 by %c255_i32 dim 1 : vector<8x256xf32>, i32 -> vector<8x256xf32>
    %32 = vector.extract_strided_slice %9 {offsets = [5, 0], sizes = [1, 256], strides = [1, 1]} : vector<9x256xf32> to vector<1x256xf32>
    %33 = vector.broadcast %32 : vector<1x256xf32> to vector<8x256xf32>
    %34 = arith.mulf %31, %33 : vector<8x256xf32>
    %c40 = arith.constant 40 : index
    %c0_20 = arith.constant 0 : index
    %35 = vector.load %arg11[%c40, %c0_20] : memref<72x256xf32, #tpu.memory_space<vmem>>, vector<8x256xf32>
    tpu.vector_store %arg11[%c40, %c0_20], %34 {strides = array<i32>} : memref<72x256xf32, #tpu.memory_space<vmem>>, vector<8x256xf32>,
    %c241_i32 = arith.constant 241 : i32
    %36 = tpu.dynamic_rotate %8 by %c241_i32 dim 1 : vector<8x256xf32>, i32 -> vector<8x256xf32>
    %37 = vector.extract_strided_slice %9 {offsets = [6, 0], sizes = [1, 256], strides = [1, 1]} : vector<9x256xf32> to vector<1x256xf32>
    %38 = vector.broadcast %37 : vector<1x256xf32> to vector<8x256xf32>
    %39 = arith.mulf %36, %38 : vector<8x256xf32>
    %c48 = arith.constant 48 : index
    %c0_21 = arith.constant 0 : index
    %40 = vector.load %arg11[%c48, %c0_21] : memref<72x256xf32, #tpu.memory_space<vmem>>, vector<8x256xf32>
    tpu.vector_store %arg11[%c48, %c0_21], %39 {strides = array<i32>} : memref<72x256xf32, #tpu.memory_space<vmem>>, vector<8x256xf32>,
    %c240_i32 = arith.constant 240 : i32
    %41 = tpu.dynamic_rotate %8 by %c240_i32 dim 1 : vector<8x256xf32>, i32 -> vector<8x256xf32>
    %42 = vector.extract_strided_slice %9 {offsets = [7, 0], sizes = [1, 256], strides = [1, 1]} : vector<9x256xf32> to vector<1x256xf32>
    %43 = vector.broadcast %42 : vector<1x256xf32> to vector<8x256xf32>
    %44 = arith.mulf %41, %43 : vector<8x256xf32>
    %c56 = arith.constant 56 : index
    %c0_22 = arith.constant 0 : index
    %45 = vector.load %arg11[%c56, %c0_22] : memref<72x256xf32, #tpu.memory_space<vmem>>, vector<8x256xf32>
    tpu.vector_store %arg11[%c56, %c0_22], %44 {strides = array<i32>} : memref<72x256xf32, #tpu.memory_space<vmem>>, vector<8x256xf32>,
    %c239_i32 = arith.constant 239 : i32
    %46 = tpu.dynamic_rotate %8 by %c239_i32 dim 1 : vector<8x256xf32>, i32 -> vector<8x256xf32>
    %47 = vector.extract_strided_slice %9 {offsets = [8, 0], sizes = [1, 256], strides = [1, 1]} : vector<9x256xf32> to vector<1x256xf32>
    %48 = vector.broadcast %47 : vector<1x256xf32> to vector<8x256xf32>
    %49 = arith.mulf %46, %48 : vector<8x256xf32>
    %c64 = arith.constant 64 : index
    %c0_23 = arith.constant 0 : index
    %50 = vector.load %arg11[%c64, %c0_23] : memref<72x256xf32, #tpu.memory_space<vmem>>, vector<8x256xf32>
    tpu.vector_store %arg11[%c64, %c0_23], %49 {strides = array<i32>} : memref<72x256xf32, #tpu.memory_space<vmem>>, vector<8x256xf32>,
    %c0_24 = arith.constant 0 : index
    %c0_25 = arith.constant 0 : index
    %51 = vector.load %arg5[%c0_24, %c0_25] : memref<8x72xf32, #tpu.memory_space<vmem>>, vector<8x72xf32>
    %c0_26 = arith.constant 0 : index
    %c0_27 = arith.constant 0 : index
    %52 = vector.load %arg11[%c0_26, %c0_27] : memref<72x256xf32, #tpu.memory_space<vmem>>, vector<72x256xf32>
    %cst_28 = arith.constant dense<0.000000e+00> : vector<8x256xf32>
    %53 = tpu.matmul %51, %52, %cst_28 {dimension_numbers = #tpu.dot_dimension_numbers<[1], [0], [0], [1], [0, 0, 1, 1], [], []>} : vector<8x72xf32>, vector<72x256xf32>, vector<8x256xf32> -> vector<8x256xf32>
    %c0_29 = arith.constant 0 : index
    %c0_30 = arith.constant 0 : index
    %54 = vector.load %arg6[%c0_29, %c0_30] : memref<8x1xf32, #tpu.memory_space<vmem>>, vector<8x1xf32>
    %55 = vector.broadcast %54 : vector<8x1xf32> to vector<8x256xf32>
    %56 = arith.addf %53, %55 : vector<8x256xf32>
    %cst_31 = arith.constant 0.000000e+00 : f32
    %57 = vector.broadcast %cst_31 : f32 to vector<8x256xf32>
    %58 = arith.maximumf %56, %57 : vector<8x256xf32>
    %c17_i32_32 = arith.constant 17 : i32
    %59 = tpu.dynamic_rotate %58 by %c17_i32_32 dim 1 : vector<8x256xf32>, i32 -> vector<8x256xf32>
    %60 = vector.extract_strided_slice %9 {offsets = [0, 0], sizes = [1, 256], strides = [1, 1]} : vector<9x256xf32> to vector<1x256xf32>
    %61 = vector.broadcast %60 : vector<1x256xf32> to vector<8x256xf32>
    %62 = arith.mulf %59, %61 : vector<8x256xf32>
    %c0_33 = arith.constant 0 : index
    %c0_34 = arith.constant 0 : index
    %63 = vector.load %arg12[%c0_33, %c0_34] : memref<72x256xf32, #tpu.memory_space<vmem>>, vector<8x256xf32>
    tpu.vector_store %arg12[%c0_33, %c0_34], %62 {strides = array<i32>} : memref<72x256xf32, #tpu.memory_space<vmem>>, vector<8x256xf32>,
    %c16_i32_35 = arith.constant 16 : i32
    %64 = tpu.dynamic_rotate %58 by %c16_i32_35 dim 1 : vector<8x256xf32>, i32 -> vector<8x256xf32>
    %65 = vector.extract_strided_slice %9 {offsets = [1, 0], sizes = [1, 256], strides = [1, 1]} : vector<9x256xf32> to vector<1x256xf32>
    %66 = vector.broadcast %65 : vector<1x256xf32> to vector<8x256xf32>
    %67 = arith.mulf %64, %66 : vector<8x256xf32>
    %c8_36 = arith.constant 8 : index
    %c0_37 = arith.constant 0 : index
    %68 = vector.load %arg12[%c8_36, %c0_37] : memref<72x256xf32, #tpu.memory_space<vmem>>, vector<8x256xf32>
    tpu.vector_store %arg12[%c8_36, %c0_37], %67 {strides = array<i32>} : memref<72x256xf32, #tpu.memory_space<vmem>>, vector<8x256xf32>,
    %c15_i32_38 = arith.constant 15 : i32
    %69 = tpu.dynamic_rotate %58 by %c15_i32_38 dim 1 : vector<8x256xf32>, i32 -> vector<8x256xf32>
    %70 = vector.extract_strided_slice %9 {offsets = [2, 0], sizes = [1, 256], strides = [1, 1]} : vector<9x256xf32> to vector<1x256xf32>
    %71 = vector.broadcast %70 : vector<1x256xf32> to vector<8x256xf32>
    %72 = arith.mulf %69, %71 : vector<8x256xf32>
    %c16_39 = arith.constant 16 : index
    %c0_40 = arith.constant 0 : index
    %73 = vector.load %arg12[%c16_39, %c0_40] : memref<72x256xf32, #tpu.memory_space<vmem>>, vector<8x256xf32>
    tpu.vector_store %arg12[%c16_39, %c0_40], %72 {strides = array<i32>} : memref<72x256xf32, #tpu.memory_space<vmem>>, vector<8x256xf32>,
    %c1_i32_41 = arith.constant 1 : i32
    %74 = tpu.dynamic_rotate %58 by %c1_i32_41 dim 1 : vector<8x256xf32>, i32 -> vector<8x256xf32>
    %75 = vector.extract_strided_slice %9 {offsets = [3, 0], sizes = [1, 256], strides = [1, 1]} : vector<9x256xf32> to vector<1x256xf32>
    %76 = vector.broadcast %75 : vector<1x256xf32> to vector<8x256xf32>
    %77 = arith.mulf %74, %76 : vector<8x256xf32>
    %c24_42 = arith.constant 24 : index
    %c0_43 = arith.constant 0 : index
    %78 = vector.load %arg12[%c24_42, %c0_43] : memref<72x256xf32, #tpu.memory_space<vmem>>, vector<8x256xf32>
    tpu.vector_store %arg12[%c24_42, %c0_43], %77 {strides = array<i32>} : memref<72x256xf32, #tpu.memory_space<vmem>>, vector<8x256xf32>,
    %c32_44 = arith.constant 32 : index
    %c0_45 = arith.constant 0 : index
    %79 = vector.load %arg12[%c32_44, %c0_45] : memref<72x256xf32, #tpu.memory_space<vmem>>, vector<8x256xf32>
    tpu.vector_store %arg12[%c32_44, %c0_45], %58 {strides = array<i32>} : memref<72x256xf32, #tpu.memory_space<vmem>>, vector<8x256xf32>,
    %c255_i32_46 = arith.constant 255 : i32
    %80 = tpu.dynamic_rotate %58 by %c255_i32_46 dim 1 : vector<8x256xf32>, i32 -> vector<8x256xf32>
    %81 = vector.extract_strided_slice %9 {offsets = [5, 0], sizes = [1, 256], strides = [1, 1]} : vector<9x256xf32> to vector<1x256xf32>
    %82 = vector.broadcast %81 : vector<1x256xf32> to vector<8x256xf32>
    %83 = arith.mulf %80, %82 : vector<8x256xf32>
    %c40_47 = arith.constant 40 : index
    %c0_48 = arith.constant 0 : index
    %84 = vector.load %arg12[%c40_47, %c0_48] : memref<72x256xf32, #tpu.memory_space<vmem>>, vector<8x256xf32>
    tpu.vector_store %arg12[%c40_47, %c0_48], %83 {strides = array<i32>} : memref<72x256xf32, #tpu.memory_space<vmem>>, vector<8x256xf32>,
    %c241_i32_49 = arith.constant 241 : i32
    %85 = tpu.dynamic_rotate %58 by %c241_i32_49 dim 1 : vector<8x256xf32>, i32 -> vector<8x256xf32>
    %86 = vector.extract_strided_slice %9 {offsets = [6, 0], sizes = [1, 256], strides = [1, 1]} : vector<9x256xf32> to vector<1x256xf32>
    %87 = vector.broadcast %86 : vector<1x256xf32> to vector<8x256xf32>
    %88 = arith.mulf %85, %87 : vector<8x256xf32>
    %c48_50 = arith.constant 48 : index
    %c0_51 = arith.constant 0 : index
    %89 = vector.load %arg12[%c48_50, %c0_51] : memref<72x256xf32, #tpu.memory_space<vmem>>, vector<8x256xf32>
    tpu.vector_store %arg12[%c48_50, %c0_51], %88 {strides = array<i32>} : memref<72x256xf32, #tpu.memory_space<vmem>>, vector<8x256xf32>,
    %c240_i32_52 = arith.constant 240 : i32
    %90 = tpu.dynamic_rotate %58 by %c240_i32_52 dim 1 : vector<8x256xf32>, i32 -> vector<8x256xf32>
    %91 = vector.extract_strided_slice %9 {offsets = [7, 0], sizes = [1, 256], strides = [1, 1]} : vector<9x256xf32> to vector<1x256xf32>
    %92 = vector.broadcast %91 : vector<1x256xf32> to vector<8x256xf32>
    %93 = arith.mulf %90, %92 : vector<8x256xf32>
    %c56_53 = arith.constant 56 : index
    %c0_54 = arith.constant 0 : index
    %94 = vector.load %arg12[%c56_53, %c0_54] : memref<72x256xf32, #tpu.memory_space<vmem>>, vector<8x256xf32>
    tpu.vector_store %arg12[%c56_53, %c0_54], %93 {strides = array<i32>} : memref<72x256xf32, #tpu.memory_space<vmem>>, vector<8x256xf32>,
    %c239_i32_55 = arith.constant 239 : i32
    %95 = tpu.dynamic_rotate %58 by %c239_i32_55 dim 1 : vector<8x256xf32>, i32 -> vector<8x256xf32>
    %96 = vector.extract_strided_slice %9 {offsets = [8, 0], sizes = [1, 256], strides = [1, 1]} : vector<9x256xf32> to vector<1x256xf32>
    %97 = vector.broadcast %96 : vector<1x256xf32> to vector<8x256xf32>
    %98 = arith.mulf %95, %97 : vector<8x256xf32>
    %c64_56 = arith.constant 64 : index
    %c0_57 = arith.constant 0 : index
    %99 = vector.load %arg12[%c64_56, %c0_57] : memref<72x256xf32, #tpu.memory_space<vmem>>, vector<8x256xf32>
    tpu.vector_store %arg12[%c64_56, %c0_57], %98 {strides = array<i32>} : memref<72x256xf32, #tpu.memory_space<vmem>>, vector<8x256xf32>,
    %c0_58 = arith.constant 0 : index
    %c0_59 = arith.constant 0 : index
    %100 = vector.load %arg7[%c0_58, %c0_59] : memref<4x72xf32, #tpu.memory_space<vmem>>, vector<4x72xf32>
    %c0_60 = arith.constant 0 : index
    %c0_61 = arith.constant 0 : index
    %101 = vector.load %arg12[%c0_60, %c0_61] : memref<72x256xf32, #tpu.memory_space<vmem>>, vector<72x256xf32>
    %cst_62 = arith.constant dense<0.000000e+00> : vector<4x256xf32>
    %102 = tpu.matmul %100, %101, %cst_62 {dimension_numbers = #tpu.dot_dimension_numbers<[1], [0], [0], [1], [0, 0, 1, 1], [], []>} : vector<4x72xf32>, vector<72x256xf32>, vector<4x256xf32> -> vector<4x256xf32>
    %c0_63 = arith.constant 0 : index
    %c0_64 = arith.constant 0 : index
    %103 = vector.load %arg8[%c0_63, %c0_64] : memref<4x1xf32, #tpu.memory_space<vmem>>, vector<4x1xf32>
    %104 = vector.broadcast %103 : vector<4x1xf32> to vector<4x256xf32>
    %105 = arith.addf %102, %104 : vector<4x256xf32>
    %cst_65 = arith.constant 0.000000e+00 : f32
    %106 = vector.broadcast %cst_65 : f32 to vector<4x256xf32>
    %107 = arith.maximumf %105, %106 : vector<4x256xf32>
    %c0_66 = arith.constant 0 : index
    %c0_67 = arith.constant 0 : index
    %c0_68 = arith.constant 0 : index
    %108 = vector.load %arg9[%c0_66, %c0_67, %c0_68] : memref<1x4x256xf32, #tpu.memory_space<vmem>>, vector<1x4x256xf32>
    %109 = vector.shape_cast %108 : vector<1x4x256xf32> to vector<4x256xf32>
    %110 = vector.shape_cast %107 : vector<4x256xf32> to vector<1x4x256xf32>
    tpu.vector_store %arg9[%c0_66, %c0_67, %c0_68], %110 {strides = array<i32>} : memref<1x4x256xf32, #tpu.memory_space<vmem>>, vector<1x4x256xf32>,
    return
  }
  func.func @transform_0(%arg0: i32) -> (i32, i32, i32) {
    %c0_i32 = arith.constant 0 : i32
    %c0_i32_0 = arith.constant 0 : i32
    %c0_i32_1 = arith.constant 0 : i32
    return %arg0, %c0_i32, %c0_i32_0 : i32, i32, i32
  }
  func.func @transform_1(%arg0: i32) -> (i32, i32, i32) {
    %c0_i32 = arith.constant 0 : i32
    %c0_i32_0 = arith.constant 0 : i32
    %c0_i32_1 = arith.constant 0 : i32
    return %arg0, %c0_i32, %c0_i32_0 : i32, i32, i32
  }
  func.func @transform_2(%arg0: i32) -> (i32, i32) {
    %c0_i32 = arith.constant 0 : i32
    %c0_i32_0 = arith.constant 0 : i32
    %c0_i32_1 = arith.constant 0 : i32
    return %c0_i32, %c0_i32_0 : i32, i32
  }
  func.func @transform_3(%arg0: i32) -> (i32, i32) {
    %c0_i32 = arith.constant 0 : i32
    %c0_i32_0 = arith.constant 0 : i32
    %c0_i32_1 = arith.constant 0 : i32
    return %c0_i32, %c0_i32_0 : i32, i32
  }
  func.func @transform_4(%arg0: i32) -> (i32, i32) {
    %c0_i32 = arith.constant 0 : i32
    %c0_i32_0 = arith.constant 0 : i32
    %c0_i32_1 = arith.constant 0 : i32
    return %c0_i32, %c0_i32_0 : i32, i32
  }
  func.func @transform_5(%arg0: i32) -> (i32, i32) {
    %c0_i32 = arith.constant 0 : i32
    %c0_i32_0 = arith.constant 0 : i32
    %c0_i32_1 = arith.constant 0 : i32
    return %c0_i32, %c0_i32_0 : i32, i32
  }
  func.func @transform_6(%arg0: i32) -> (i32, i32) {
    %c0_i32 = arith.constant 0 : i32
    %c0_i32_0 = arith.constant 0 : i32
    %c0_i32_1 = arith.constant 0 : i32
    return %c0_i32, %c0_i32_0 : i32, i32
  }
  func.func @transform_7(%arg0: i32) -> (i32, i32) {
    %c0_i32 = arith.constant 0 : i32
    %c0_i32_0 = arith.constant 0 : i32
    %c0_i32_1 = arith.constant 0 : i32
    return %c0_i32, %c0_i32_0 : i32, i32
  }
  func.func @transform_8(%arg0: i32) -> (i32, i32, i32) {
    %c0_i32 = arith.constant 0 : i32
    %c0_i32_0 = arith.constant 0 : i32
    %c0_i32_1 = arith.constant 0 : i32
    return %arg0, %c0_i32, %c0_i32_0 : i32, i32, i32
  }
}

</mosaic_0001>

<bundles_post_ra>
// kernel: tpu_custom_call.1
= control target key start
LH: loop header
LB: loop body
LE: loop exit
PB: predicated region body
PF: predicated region fallthrough
CT: control target
= control target key end

     0   :  { %13 = vsyncpa [#allocation6], 0  ;;  %s1900_s0 = inlined_call_operand.hbm [shape: f32[2,4,64], index: 0, kind: input, shape index: {}]   ;;  %s1901_s1 = inlined_call_operand.vmem [shape: f32[2,4,256], index: 1, kind: input, shape index: {}]   ;;  %s1902_s2 = inlined_call_operand.hbm [shape: f32[64,256], index: 2, kind: input, shape index: {}]   ;;  %s1903_s3 = inlined_call_operand.hbm [shape: f32[9,256], index: 3, kind: input, shape index: {}]   ;;  %s1904_s4 = inlined_call_operand.vmem [shape: f32[8,72], index: 4, kind: input, shape index: {}]   ;;  %s1905_s5 = inlined_call_operand.vmem [shape: f32[8,1], index: 5, kind: input, shape index: {}]   ;;  %s1906_s6 = inlined_call_operand.vmem [shape: f32[4,72], index: 6, kind: input, shape index: {}]   ;;  %s1907_s7 = inlined_call_operand.vmem [shape: f32[4,1], index: 7, kind: input, shape index: {}]   ;;  %s1908_s8 = inlined_call_operand.hbm [shape: f32[2,4,256], index: 8, kind: output, shape index: {}]  }
   0x1   :  { %15 = vsyncpa [#allocation6 + $0x1], 0 }
   0x2   :  { %16 = vsyncpa [#allocation9], 0 }
   0x3   :  { %17 = vsyncpa [#allocation7], 0 }
   0x4   :  { %19 = vsyncpa [#allocation7 + $0x1], 0  ;;  %s1418_s27 = smov 0   ;;  %s1420_s28 = smov 0  }
   0x5   :  { %s1422_s29 = smov 0   ;;  %s1424_s30 = smov 0  }
   0x6 LB: > { %s1439_s9 = sadd.s32 4294967295, %s1355_s30   ;;  %s1044_s10 = sadd.s32 4294967294, %s1355_s30   ;;  %s1355_s30 = sphi %s1424_s30, %s1928_s30   ;;  %s1351_s29 = sphi %s1422_s29, %s1927_s29   ;;  %s1347_s28 = sphi %s1420_s28, %s1926_s28   ;;  %s1343_s27 = sphi %s1418_s27, %s1925_s27  }
   0x7   : > { %p45_p0 = scmp.ne.s32.totalorder %s1347_s28, %s1343_s27  ;;  %p1909_p1 = scmp.eq.s32.totalorder %s1439_s9, 0 }
   0x8   : > { %p227_p3 = scmp.eq.s32.totalorder %s1044_s10, 1  ;;  %p1045_p5 = scmp.ge.s32.totalorder %s1355_s30, 1 }
   0x9   : > { %p1448_p4 = por %p1909_p1, %p45_p0  ;;  %p234_p7 = scmp.lt.s32.totalorder %s1355_s30, 3 }
   0xa   : > { %p1453_p6 = por %p227_p3, %p45_p0  ;;  %s1357_s14 = smov [#allocation8]  }
   0xb   : > { %s1912_s11 = scalar_select %p1448_p4, 1, 0 }
   0xc   : > { %s1913_s12 = scalar_select %p1453_p6, 1, 0 }
   0xd   : > { %p1458_p8 = pnand %p1045_p5, %p234_p7  ;;  %s246_s15 = sshll.u32 %s1357_s14, 4  ;;  %s1462_s15 = int_to_ptr.vmem [resolvable:$true] %s246_s15 }
   0xe   : > { %s1358_s17 = smov [#allocation10]   ;;  %s1199_s21 = scalar_lea.hbm %s1902_s2, 2048 }
   0xf   : > { %p1130_p9 = pneg %p1458_p8  ;;  %s259_s18 = sshll.u32 %s1358_s17, 4  ;;  %s1473_s18 = int_to_ptr.vmem [resolvable:$true] %s259_s18 }
  0x10   : > { %p1200_p12 = scmp.ne.s32.totalorder %s1902_s2, %s1199_s21  ;;  %p1206_p5 = scmp.lt.u32.totalorder %s1199_s21, %s1902_s2 }
  0x11   : > { %p1469_p11 = pnand %p1130_p9, %p1909_p1 }
  0x13   : > { %p1201_p13 = pneg %p1469_p11 }
  0x15   : > { %p1202_p0 = pnand %p1201_p13, %p1200_p12 }
  0x17   : > { %p1203_p3 = pneg %p1202_p0 }
  0x19   : > { %p1208_p7 = pnand %p1206_p5, %p1203_p3 }
  0x1b   : > { %1211 = shalt.err (!%p1208_p7)
}
  0x1c   : > { %s1212_s26 = scalar_lea.vmem %s1462_s15, 2048  ;;  %p1220_p2 = scmp.lt.s32.totalorder %s1462_s15, %s1462_s15 }
  0x1d   : > { %p1213_p9 = scmp.ne.s32.totalorder %s1462_s15, %s1212_s26  ;;  %p1221_p12 = scmp.lt.s32.totalorder %s1212_s26, %s1212_s26 }
  0x1f   : > { %p1215_p10 = pnand %p1213_p9, %p1201_p13  ;;  %p1222_p0 = por %p1221_p12, %p1220_p2 }
  0x21   : > { %p1216_p1 = pneg %p1215_p10 }
  0x23   : > { %p1223_p6 = pnand %p1222_p0, %p1216_p1 }
  0x25   : > { %1226 = shalt.err (!%p1223_p6)
}
  0x26   : > { %s1359_s10 = smov 256   ;;  %s1360_s14 = smov 16  }
  0x27   : > { %1133 = dma.hbm_to_vmem [thread:$0]  (!%p1469_p11), %s1902_s2, 2048, %s1462_s15, [#allocation9], %s1359_s10, %s1359_s10, %s1360_s14  }
  0x28   : > { %s1227_s22 = scalar_lea.hbm %s1903_s3, 512 }
  0x29   : > { %p1228_p2 = scmp.ne.s32.totalorder %s1903_s3, %s1227_s22  ;;  %p1234_p10 = scmp.lt.u32.totalorder %s1227_s22, %s1903_s3 }
  0x2b   : > { %p1230_p1 = pnand %p1228_p2, %p1201_p13 }
  0x2d   : > { %p1231_p6 = pneg %p1230_p1 }
  0x2f   : > { %p1236_p3 = pnand %p1234_p10, %p1231_p6 }
  0x31   : > { %1239 = shalt.err (!%p1236_p3)
}
  0x32   : > { %s1240_s15 = scalar_lea.vmem %s1473_s18, 512  ;;  %p1248_p12 = scmp.lt.s32.totalorder %s1473_s18, %s1473_s18 }
  0x33   : > { %p1241_p5 = scmp.ne.s32.totalorder %s1473_s18, %s1240_s15  ;;  %p1249_p0 = scmp.lt.s32.totalorder %s1240_s15, %s1240_s15 }
  0x35   : > { %p1243_p7 = pnand %p1241_p5, %p1201_p13  ;;  %p1250_p2 = por %p1249_p0, %p1248_p12 }
  0x37   : > { %p1244_p9 = pneg %p1243_p7 }
  0x39   : > { %p1251_p1 = pnand %p1250_p2, %p1244_p9 }
  0x3b   : > { %1254 = shalt.err (!%p1251_p1)
}
  0x3c   : > { %1136 = dma.hbm_to_vmem [thread:$0]  (!%p1469_p11), %s1903_s3, 512, %s1473_s18, [#allocation9], %s1359_s10, %s1359_s10, %s1360_s14  }
  0x3d   : > { %s1528_s20 = sadd.s32 1, %s1355_s30   ;;  %s32_s16 = sadd.s32 1, %s1351_s29 }
  0x3e   : > { %s29_s21 = ssub.s32 %s1355_s30, %s1528_s20  ;;  %p39_p13 = scmp.ne.s32.totalorder %s1351_s29, %s1347_s28 }
  0x3f   : > { %p30_p6 = scmp.eq.s32.totalorder %s29_s21, 0  ;;  %p40_p10 = scmp.eq.s32.totalorder %s1355_s30, 0 }
  0x40   : > { %p1916_p3 = scmp.eq.s32.totalorder %s1439_s9, 1  ;;  %p1147_p7 = scmp.lt.s32.totalorder %s1355_s30, 2 }
  0x41   : > { %s1544_s23 = scalar_select %p30_p6, %s1351_s29, %s32_s16  }
  0x42   : > { %p1538_p5 = por %p1916_p3, %p39_p13  ;;  %p41_p9 = por %p40_p10, %p39_p13 }
  0x43   : > { %s285_s24 = sand.u32 1, %s1351_s29   ;;  %s1050_s18 = sshll.u32 %s1355_s30, 6 }
  0x44   : > { %s1917_s22 = scalar_select %p1538_p5, 1, 0 }
  0x45   : > { %s1049_s25 = sshll.u32 %s285_s24, 2  ;;  %s1551_s26 = scalar_lea.hbm %s1900_s0, %s1050_s18 }
  0x46   : > { %s289_s15 = scalar_lea.vmem [#allocation5], %s1049_s25  ;;  %p1555_p11 = pnand %p1147_p7, %p41_p9 }
  0x47   : > { %s296_s17 = sshll.u32 %s289_s15, 4  ;;  %s286_s16 = scalar_lea.sflag [#allocation6], %s285_s24  ;;  %s1553_s17 = int_to_ptr.vmem [resolvable:$true] %s296_s17 }
  0x48   : > { %s1255_s21 = scalar_lea.hbm %s1551_s26, 64  ;;  %p1257_p0 = pneg %p1555_p11 }
  0x49   : > { %p1256_p12 = scmp.ne.s32.totalorder %s1551_s26, %s1255_s21  ;;  %s1260_s10 = scalar_lea.hbm %s1900_s0, 128 }
  0x4a   : > { %p1261_p13 = scmp.lt.u32.totalorder %s1551_s26, %s1900_s0  ;;  %p1262_p6 = scmp.lt.u32.totalorder %s1260_s10, %s1255_s21 }
  0x4b   : > { %p1258_p2 = pnand %p1257_p0, %p1256_p12  ;;  %p1264_p3 = scmp.lt.u32.totalorder %s1255_s21, %s1551_s26 }
  0x4c   : > { %p1263_p10 = por %p1262_p6, %p1261_p13 }
  0x4d   : > { %p1259_p1 = pneg %p1258_p2 }
  0x4e   : > { %p1265_p7 = por %p1264_p3, %p1263_p10 }
  0x50   : > { %p1266_p9 = pnand %p1265_p7, %p1259_p1 }
  0x52   : > { %1269 = shalt.err (!%p1266_p9)
}
  0x53   : > { %s1270_s24 = scalar_lea.vmem %s1553_s17, 64  ;;  %s1361_s18 = smov [#allocation5]  }
  0x54   : > { %p1271_p12 = scmp.ne.s32.totalorder %s1553_s17, %s1270_s24  ;;  %s1275_s25 = sshll.u32 %s1361_s18, 4  ;;  %s1276_s25 = int_to_ptr.vmem [resolvable:$false] %s1275_s25 }
  0x55   : > { %s1277_s14 = scalar_lea.vmem %s1276_s25, 128  ;;  %p1278_p4 = scmp.lt.s32.totalorder %s1553_s17, %s1276_s25 }
  0x56   : > { %p1273_p2 = pnand %p1271_p12, %p1257_p0  ;;  %p1279_p13 = scmp.lt.s32.totalorder %s1277_s14, %s1270_s24 }
  0x58   : > { %p1274_p5 = pneg %p1273_p2  ;;  %p1280_p6 = por %p1279_p13, %p1278_p4 }
  0x5a   : > { %p1281_p10 = pnand %p1280_p6, %p1274_p5 }
  0x5c   : > { %1284 = shalt.err (!%p1281_p10)
}
  0x5d   : > { %1140 = dma.hbm_to_vmem [thread:$0]  (!%p1555_p11), %s1551_s26, 64, %s1553_s17, %s286_s16  }
  0x5e   : > { %313 = sbr.rel (%p1458_p8) target bundleno = 1099 (0x44b), region = 52  ;;  %s1587_s21 = sand.u32 (!%p1458_p8), 1, %s1347_s28  }
  0x5f   : > { %s1052_s10 = sshll.u32 (!%p1458_p8), %s1587_s21, 2  ;;  %s316_s15 = scalar_lea.sflag (!%p1458_p8), [#allocation6], %s1587_s21 }
  0x60   : > { %s1591_s24 = scalar_lea.vmem (!%p1458_p8), [#allocation5], %s1052_s10  ;;  %p1919_p4 = scmp.ne.s32.totalorder (!%p1458_p8), %s1912_s11, 0 }
  0x65   : > { %1330 = dma.done.wait (%p1919_p4), %s316_s15, 64  }
  0x66   : > { %1332 = vsyncadd (%p1919_p4), %s316_s15, 4294967232  ;;  %p1920_p5 = scmp.eq.s32.totalorder %s1439_s9, 0 }
  0x68   : > { %1334 = dma.done.wait (%p1920_p5), [#allocation9], 2560   ;;  %p1921_p8 = pmov %p1920_p5 }
  0x69   : > { %v1362_v0 = vmov 0.0   ;;  %v372_v1 = vld [vmem:[#allocation8 + $0x8] sm:$0xff]  ;;  %v374_v2 = vld [vmem:[#allocation8 + $0x18] sm:$0xff]  ;;  %v371_v3 = vld [vmem:[#allocation8] sm:$0xff]  ;;  %vm387_vm0 = vcmask 523264   ;;  %p365_p11 = scmp.lt.s32.totalorder %s1439_s9, 1  ;;  %v486_v36 = vlaneseq }
  0x6a   : > { %1336 = vsyncadd (%p1921_p8), [#allocation9], 4294964736  ;;  %455 = vmatprep.mubr.f32.mxu0 %v1362_v0  ;;  %731 = vmatprep.mubr.f32.mxu1 %v1362_v0  ;;  %v1070_v4 = vpack.c.bf16 %v374_v2, %v372_v1  ;;  %v373_v5 = vld [vmem:[#allocation8 + $0x10] sm:$0xff]  ;;  %v376_v6 = vld [vmem:[#allocation8 + $0x28] sm:$0xff]  ;;  %s1363_s16 = smov 16   ;;  %s1364_s18 = smov 17  }
  0x6b   : > { %v378_v7 = vld [vmem:[#allocation8 + $0x38] sm:$0xff]  ;;  %v1072_v8 = vpack.c.bf16 %v373_v5, %v371_v3  ;;  %v375_v10 = vld [vmem:[#allocation8 + $0x20] sm:$0xff]  ;;  %v377_v11 = vld [vmem:[#allocation8 + $0x30] sm:$0xff]  ;;  %s366_s11 = scalar_select %p365_p11, %s1439_s9, 1  ;;  %v1369_v34 = vmov 0   ;;  %v1646_v39 = vshrl.u32 %v486_v36, 7 }
  0x6c   : > { %v1074_v9 = vpack.c.bf16 %v378_v7, %v376_v6  ;;  %v380_v12 = vld [vmem:[#allocation8 + $0x48] sm:$0xff]  ;;  %1071 = vmatprep.subr.bf16.mxu0 %v1070_v4  ;;  %v382_v13 = vld [vmem:[#allocation8 + $0x58] sm:$0xff]  ;;  %v1076_v14 = vpack.c.bf16 %v377_v11, %v375_v10  ;;  %v379_v16 = vld [vmem:[#allocation8 + $0x40] sm:$0xff]  ;;  %s1365_s25 = smov 15   ;;  %s1366_s14 = smov 1   ;;  %1197 = vset.pattern.permute.xlu0 %v1369_v34  ;;  %v1648_v40 = vand.u32 127, %v486_v36 }
  0x6d   : > { %1073 = vmatpush1.bf16.msra.mxu0 %v1072_v8  ;;  %v1078_v15 = vpack.c.bf16 %v382_v13, %v380_v12  ;;  %v381_v17 = vld [vmem:[#allocation8 + $0x50] sm:$0xff]  ;;  %v384_v18 = vld [vmem:[#allocation8 + $0x68] sm:$0xff]  ;;  %v386_v19 = vld [vmem:[#allocation8 + $0x78] sm:$0xff]  ;;  %s1068_s13 = sshll.u32 %s366_s11, 3  ;;  %s1367_s10 = smov 127   ;;  %v512_v42 = vsub.s32 1, %v1646_v39 }
  0x6e   : > { %1075 = vmatprep.subr.bf16.mxu0 %v1074_v9  ;;  %v1080_v20 = vpack.c.bf16 %v381_v17, %v379_v16  ;;  %v1082_v21 = vpack.c.bf16 %v386_v19, %v384_v18  ;;  %v383_v22 = vld [vmem:[#allocation8 + $0x60] sm:$0xff]  ;;  %v385_v23 = vld [vmem:[#allocation8 + $0x70] sm:$0xff]  ;;  %v370_v25 = vld [vmem:[%s1591_s24] sm:$0xf]  ;;  %s369_s19 = scalar_lea.vmem %s1901_s1, %s1068_s13  ;;  %s1368_s15 = smov 113   ;;  %vm507_vm1 = vcmp.lt.s32.totalorder %v1648_v40, 16 }
  0x6f   : > { %v1084_v24 = vpack.c.bf16 %v385_v23, %v383_v22  ;;  %v462_v26 = vld [vmem:[%s369_s19] sm:$0xff]  ;;  %s1370_s24 = smov 112   ;;  %s1371_s11 = smov 111   ;;  %v1651_v44 = vld [vmem:[#allocation10] sm:$0xff]  ;;  %v550_v46 = vsub.s32 3, %v1646_v39  ;;  %v493_v47 = vsub.s32 0, %v1646_v39 }
  0x70   : > { %466 = vst [vmem:[#allocation2] sm:$0xf] %v462_v26  ;;  %v464_v27 = vcombine.high %v462_v26, %v462_v26  ;;  %v657_v35 = vld [vmem:[%s1905_s5] sm:$0xff]  ;;  %v531_v48 = vsub.s32 2, %v1646_v39  ;;  %v1660_v49 = vrot.slane %v1651_v44, %v512_v42  ;;  %v571_v52 = vsub.s32 5, %v1646_v39  ;;  %s929_s19 = scalar_lea.sflag [#allocation7], %s1587_s21 }
  0x71   : > { %1077 = vmatpush1.bf16.msra.mxu0 %v1076_v14  ;;  %v1653_v45 = vld [vmem:[#allocation10 + $0x8] sm:$0xff]  ;;  %vm526_vm2 = vcmp.lt.s32.totalorder %v1648_v40, 15  ;;  %vm545_vm3 = vcmp.lt.s32.totalorder %v1648_v40, 1  ;;  %vm488_vm4 = vcmp.lt.s32.totalorder %v1648_v40, 17  ;;  %v1677_v57 = vrot.slane %v1651_v44, %v493_v47  ;;  %p1922_p1 = scmp.ne.s32.totalorder %s1917_s22, 0 }
  0x72   : > { %1079 = vmatprep.subr.bf16.mxu0 %v1078_v15  ;;  %467 = vst [vmem:[#allocation2 + $0x8] sm:$0xf] %v464_v27  ;;  %v1664_v53 = vrot.slane %v1653_v45, %v512_v42  ;;  %v1673_v56 = vrot.slane %v1653_v45, %v550_v46  ;;  %v1680_v58 = vrot.slane %v1653_v45, %v493_v47  ;;  %vm566_vm5 = vcmp.lt.s32.totalorder %v1648_v40, 127 }
  0x73   : > { %v1683_v59 = vrot.slane %v1653_v45, %v531_v48  ;;  %v1686_v60 = vrot.slane %v1651_v44, %v550_v46  ;;  %v1708_v10 = vrot.slane %v1651_v44, %v531_v48  ;;  %v1715_v18 = vrot.slane %v1651_v44, %v571_v52  ;;  %v1755_v48 = vld [vmem:[#allocation10 + $0x18] ss:$0 sm:$0xff] }
  0x74   : > { %vm585_vm6 = vcmp.lt.s32.totalorder %v1648_v40, 113  ;;  %vm604_vm7 = vcmp.lt.s32.totalorder %v1648_v40, 112  ;;  %vm623_vm8 = vcmp.lt.s32.totalorder %v1648_v40, 111  ;;  %vm663_vm9 = vcmask 588800  }
  0x75   : > { %1081 = vmatpush1.bf16.msra.mxu0 %v1080_v20  ;;  %v590_v20 = vsub.s32 6, %v1646_v39 }
  0x76   : > { %1083 = vmatprep.subr.bf16.mxu0 %v1082_v21 }
  0x79   : > { %1085 = vmatpush1.bf16.msra.mxu0 %v1084_v24  ;;  %v609_v24 = vsub.s32 7, %v1646_v39 }
  0x7b   : > { %v1739_v36 = vrot.slane %v1653_v45, %v609_v24 }
  0x7c   : > { %1058 = vmatmul.mubr.msk.f32.vlgmr.msra.gmra.mrb[0].mxu0 %vm387_vm0, %v370_v25 }
  0x7d   : > { %914 = vmatprep.mubr.f32.mxu0 %v1362_v0  ;;  %v1691_v0 = vrot.slane %v1653_v45, %v571_v52 }
 0x14f   : > { %v457_v28 = vpop.f32.mrb[0].mxu0 }
 0x150   : > { %v470_v29 = vrot.slane %v457_v28, 4  ;;  %v459_v30 = vpop.f32.mrb[1].mxu0 }
 0x151   : > { %v471_v31 = vrot.slane %v459_v30, 4  ;;  %v1731_v30 = vrot.slane %v1653_v45, %v590_v20 }
 0x152   : > { %474 = vst [vmem:[#allocation2] sm:$0xf0] %v470_v29  ;;  %v1728_v29 = vrot.slane %v1651_v44, %v590_v20 }
 0x153   : > { %475 = vst [vmem:[#allocation2 + $0x8] sm:$0xf0] %v471_v31 }
 0x159   : > { %v1607_v32 = vld [vmem:[#allocation2] sm:$0xff] }
 0x15a   : > { %503 = vrot.lane.b32.xlu1 %v1607_v32, %s1363_s16  ;;  %482 = vrot.lane.b32.xlu0 %v1607_v32, %s1364_s18  ;;  %v1613_v33 = vld [vmem:[#allocation2 + $0x8] sm:$0xff] }
 0x15e   : > { %522 = vrot.lane.b32.xlu0 %v1607_v32, %s1365_s25  ;;  %505 = vrot.lane.b32.xlu1 %v1613_v33, %s1363_s16 }
 0x162   : > { %541 = vrot.lane.b32.xlu0 %v1607_v32, %s1366_s14  ;;  %524 = vrot.lane.b32.xlu1 %v1613_v33, %s1365_s25 }
 0x166   : > { %543 = vrot.lane.b32.xlu1 %v1613_v33, %s1366_s14  ;;  %484 = vrot.lane.b32.xlu0 %v1613_v33, %s1364_s18 }
 0x16a   : > { %564 = vrot.lane.b32.xlu1 %v1613_v33, %s1367_s10  ;;  %562 = vrot.lane.b32.xlu0 %v1607_v32, %s1367_s10 }
 0x16e   : > { %583 = vrot.lane.b32.xlu1 %v1613_v33, %s1368_s15  ;;  %581 = vrot.lane.b32.xlu0 %v1607_v32, %s1368_s15 }
 0x172   : > { %602 = vrot.lane.b32.xlu1 %v1613_v33, %s1370_s24  ;;  %600 = vrot.lane.b32.xlu0 %v1607_v32, %s1370_s24 }
 0x176   : > { %621 = vrot.lane.b32.xlu1 %v1613_v33, %s1371_s11  ;;  %619 = vrot.lane.b32.xlu0 %v1607_v32, %s1371_s11 }
 0x17a   : > { %660 = vperm.xlu0 %1197, %v657_v35   ;;  %v1736_v35 = vrot.slane %v1651_v44, %v609_v24 }
 0x1cc   : > { %v504_v37 = vpop.permute.xlu1 %503  ;;  %v483_v38 = vpop.permute.xlu0 %482 }
 0x1d0   : > { %v523_v41 = vpop.permute.xlu0 %522  ;;  %v506_v43 = vpop.permute.xlu1 %505 }
 0x1d1   : > { %v508_v54 = vsel %vm507_vm1, %v504_v37, %v506_v43  ;;  %v509_v55 = vsel %vm507_vm1, %v506_v43, %v504_v37 }
 0x1d2   : > { %v518_v61 = vmul.f32 %v1660_v49, %v509_v55  ;;  %v519_v1 = vmul.f32 %v1664_v53, %v508_v54  ;;  %v1759_v55 = vld [vmem:[#allocation10 + $0x10] ss:$0 sm:$0xff] }
 0x1d4   : > { %v542_v50 = vpop.permute.xlu0 %541  ;;  %v525_v51 = vpop.permute.xlu1 %524 }
 0x1d5   : > { %v527_v2 = vsel %vm526_vm2, %v523_v41, %v525_v51  ;;  %v528_v11 = vsel %vm526_vm2, %v525_v51, %v523_v41 }
 0x1d6   : > { %v538_v12 = vmul.f32 %v1683_v59, %v527_v2  ;;  %v537_v25 = vmul.f32 %v1708_v10, %v528_v11 }
 0x1d8   : > { %v544_v62 = vpop.permute.xlu1 %543  ;;  %v485_v63 = vpop.permute.xlu0 %484 }
 0x1d9   : > { %v546_v3 = vsel %vm545_vm3, %v542_v50, %v544_v62  ;;  %v489_v4 = vsel %vm488_vm4, %v483_v38, %v485_v63  ;;  %v490_v5 = vsel %vm488_vm4, %v485_v63, %v483_v38  ;;  %v547_v6 = vsel %vm545_vm3, %v544_v62, %v542_v50 }
 0x1da   : > { %v557_v7 = vmul.f32 %v1673_v56, %v546_v3  ;;  %v499_v8 = vmul.f32 %v1677_v57, %v490_v5  ;;  %v500_v9 = vmul.f32 %v1680_v58, %v489_v4  ;;  %v556_v17 = vmul.f32 %v1686_v60, %v547_v6 }
 0x1dc   : > { %v565_v13 = vpop.permute.xlu1 %564  ;;  %v563_v14 = vpop.permute.xlu0 %562  ;;  %v1086_v15 = vpack.c.bf16 %v519_v1, %v500_v9  ;;  %v1088_v16 = vpack.c.bf16 %v518_v61, %v499_v8  ;;  %v1090_v23 = vpack.c.bf16 %v557_v7, %v538_v12  ;;  %v1092_v31 = vpack.c.bf16 %v556_v17, %v537_v25  ;;  %v638_v1 = vld [vmem:[%s1904_s4] sm:$0xff] }
 0x1dd   : > { %v568_v19 = vsel %vm566_vm5, %v565_v13, %v563_v14  ;;  %v567_v21 = vsel %vm566_vm5, %v563_v14, %v565_v13  ;;  %v841_v9 = vld [vmem:[%s1907_s7] sm:$0xf] }
 0x1de   : > { %v578_v22 = vmul.f32 %v1691_v0, %v568_v19  ;;  %1087 = vmatprep.subr.bf16.mxu1 %v1086_v15  ;;  %v577_v28 = vmul.f32 %v1715_v18, %v567_v21 }
 0x1df   : > { %1089 = vmatpush1.bf16.msra.mxu1 %v1088_v16 }
 0x1e0   : > { %v584_v26 = vpop.permute.xlu1 %583  ;;  %1091 = vmatprep.subr.bf16.mxu1 %v1090_v23  ;;  %v582_v27 = vpop.permute.xlu0 %581  ;;  %v1094_v34 = vpack.c.bf16 %v578_v22, %v1613_v33  ;;  %v1096_v43 = vpack.c.bf16 %v577_v28, %v1607_v32 }
 0x1e1   : > { %v586_v37 = vsel %vm585_vm6, %v582_v27, %v584_v26  ;;  %v587_v38 = vsel %vm585_vm6, %v584_v26, %v582_v27 }
 0x1e2   : > { %v596_v44 = vmul.f32 %v1728_v29, %v586_v37  ;;  %v597_v45 = vmul.f32 %v1731_v30, %v587_v38 }
 0x1e3   : > { %1093 = vmatpush1.bf16.msra.mxu1 %v1092_v31 }
 0x1e4   : > { %v603_v39 = vpop.permute.xlu1 %602  ;;  %1095 = vmatprep.subr.bf16.mxu1 %v1094_v34  ;;  %v601_v41 = vpop.permute.xlu0 %600 }
 0x1e5   : > { %v605_v33 = vsel %vm604_vm7, %v601_v41, %v603_v39  ;;  %v606_v42 = vsel %vm604_vm7, %v603_v39, %v601_v41 }
 0x1e6   : > { %v615_v46 = vmul.f32 %v1736_v35, %v605_v33  ;;  %v616_v47 = vmul.f32 %v1739_v36, %v606_v42 }
 0x1e7   : > { %1097 = vmatpush1.bf16.msra.mxu1 %v1096_v43 }
 0x1e8   : > { %v622_v50 = vpop.permute.xlu1 %621  ;;  %v620_v51 = vpop.permute.xlu0 %619  ;;  %v1098_v52 = vpack.c.bf16 %v616_v47, %v597_v45  ;;  %v1100_v54 = vpack.c.bf16 %v615_v46, %v596_v44 }
 0x1e9   : > { %v625_v32 = vsel %vm623_vm8, %v622_v50, %v620_v51  ;;  %v624_v61 = vsel %vm623_vm8, %v620_v51, %v622_v50 }
 0x1ea   : > { %v635_v62 = vmul.f32 %v1755_v48, %v625_v32  ;;  %1099 = vmatprep.subr.bf16.mxu1 %v1098_v52  ;;  %v634_v63 = vmul.f32 %v1759_v55, %v624_v61 }
 0x1eb   : > { %1101 = vmatpush1.bf16.msra.mxu1 %v1100_v54 }
 0x1ec   : > { %683 = vmatprep.subr.mxu1 %v635_v62 }
 0x1ef   : > { %684 = vmatpush1.msra.mxu1 %v634_v63 }
 0x1f0   : > { %1061 = vmatmul.mubr.msk.f32.vlgmr.msra.gmra.mrb[0].mxu1 %vm663_vm9, %v638_v1 }
 0x1f9   : > { %v661_v2 = vpop.permute.xlu0 %660 }
 0x2c3   : > { %v733_v3 = vpop.f32.mrb[0].mxu1 }
 0x2c4   : > { %v734_v4 = vadd.f32 %v733_v3, %v661_v2  ;;  %v735_v5 = vpop.f32.mrb[1].mxu1 }
 0x2c5   : > { %v736_v7 = vadd.f32 %v735_v5, %v661_v2 }
 0x2c6   : > { %v1769_v6 = vmax.f32 %v734_v4, 0.0 }
 0x2c7   : > { %v739_v8 = vmax.f32 %v736_v7, 0.0 }
 0x2c8   : > { %750 = vrot.lane.b32.xlu0 %v1769_v6, %s1363_s16  ;;  %740 = vrot.lane.b32.xlu1 %v1769_v6, %s1364_s18 }
 0x2cc   : > { %760 = vrot.lane.b32.xlu0 %v1769_v6, %s1365_s25  ;;  %742 = vrot.lane.b32.xlu1 %v739_v8, %s1364_s18 }
 0x2d0   : > { %770 = vrot.lane.b32.xlu0 %v1769_v6, %s1366_s14  ;;  %752 = vrot.lane.b32.xlu1 %v739_v8, %s1363_s16 }
 0x2d4   : > { %782 = vrot.lane.b32.xlu0 %v1769_v6, %s1367_s10  ;;  %762 = vrot.lane.b32.xlu1 %v739_v8, %s1365_s25 }
 0x2d8   : > { %792 = vrot.lane.b32.xlu0 %v1769_v6, %s1368_s15  ;;  %772 = vrot.lane.b32.xlu1 %v739_v8, %s1366_s14 }
 0x2dc   : > { %802 = vrot.lane.b32.xlu0 %v1769_v6, %s1370_s24  ;;  %784 = vrot.lane.b32.xlu1 %v739_v8, %s1367_s10  ;;  %s1055_s10 = sshll.u32 %s1587_s21, 3 }
 0x2e0   : > { %812 = vrot.lane.b32.xlu0 %v1769_v6, %s1371_s11  ;;  %794 = vrot.lane.b32.xlu1 %v739_v8, %s1368_s15  ;;  %s1069_s15 = sshll.u32 %s1439_s9, 7  ;;  %s1372_s9 = smov [#allocation11]  }
 0x2e1   : > { %s1856_s17 = scalar_lea.hbm %s1908_s8, %s1069_s15  ;;  %s1289_s18 = sshll.u32 %s1372_s9, 4  ;;  %s1290_s18 = int_to_ptr.vmem [resolvable:$false] %s1289_s18 }
 0x2e2   : > { %s1291_s25 = scalar_lea.vmem %s1290_s18, 256 }
 0x2e4   : > { %844 = vperm.xlu0 %1197, %v841_v9   ;;  %804 = vrot.lane.b32.xlu1 %v739_v8, %s1370_s24  ;;  %s364_s24 = scalar_lea.vmem [#allocation11], %s1055_s10 }
 0x2e8   : > { %814 = vrot.lane.b32.xlu1 %v739_v8, %s1371_s11  ;;  %s943_s11 = sshll.u32 %s364_s24, 4  ;;  %s1858_s11 = int_to_ptr.vmem [resolvable:$true] %s943_s11 }
 0x2e9   : > { %s1285_s16 = scalar_lea.vmem %s1858_s11, 128  ;;  %p1292_p9 = scmp.lt.s32.totalorder %s1858_s11, %s1290_s18 }
 0x2ea   : > { %p1286_p0 = scmp.ne.s32.totalorder %s1858_s11, %s1285_s16  ;;  %p1293_p12 = scmp.lt.s32.totalorder %s1291_s25, %s1285_s16 }
 0x2ec   : > { %p1287_p3 = pnand %p1286_p0, %p1922_p1  ;;  %p1294_p2 = por %p1293_p12, %p1292_p9 }
 0x2ee   : > { %p1288_p7 = pneg %p1287_p3 }
 0x2f0   : > { %p1295_p13 = pnand %p1294_p2, %p1288_p7 }
 0x33a   : > { %v751_v11 = vpop.permute.xlu0 %750  ;;  %v741_v12 = vpop.permute.xlu1 %740 }
 0x33e   : > { %v761_v13 = vpop.permute.xlu0 %760  ;;  %v743_v14 = vpop.permute.xlu1 %742 }
 0x33f   : > { %v744_v15 = vsel %vm488_vm4, %v741_v12, %v743_v14  ;;  %v745_v16 = vsel %vm488_vm4, %v743_v14, %v741_v12 }
 0x340   : > { %v746_v22 = vmul.f32 %v745_v16, %v1677_v57  ;;  %v747_v23 = vmul.f32 %v744_v15, %v1680_v58 }
 0x342   : > { %v771_v17 = vpop.permute.xlu0 %770  ;;  %v753_v19 = vpop.permute.xlu1 %752 }
 0x343   : > { %v754_v20 = vsel %vm507_vm1, %v751_v11, %v753_v19  ;;  %v755_v21 = vsel %vm507_vm1, %v753_v19, %v751_v11 }
 0x344   : > { %v756_v24 = vmul.f32 %v755_v21, %v1660_v49  ;;  %v757_v25 = vmul.f32 %v754_v20, %v1664_v53 }
 0x346   : > { %v1104_v26 = vpack.c.bf16 %v756_v24, %v746_v22  ;;  %v763_v27 = vpop.permute.xlu1 %762  ;;  %v1102_v28 = vpack.c.bf16 %v757_v25, %v747_v23  ;;  %v783_v31 = vpop.permute.xlu0 %782 }
 0x347   : > { %v764_v34 = vsel %vm526_vm2, %v761_v13, %v763_v27  ;;  %v765_v37 = vsel %vm526_vm2, %v763_v27, %v761_v13 }
 0x348   : > { %1103 = vmatprep.subr.bf16.mxu0 %v1102_v28  ;;  %v766_v53 = vmul.f32 %v765_v37, %v1708_v10  ;;  %v767_v58 = vmul.f32 %v764_v34, %v1683_v59 }
 0x349   : > { %1105 = vmatpush1.bf16.msra.mxu0 %v1104_v26 }
 0x34a   : > { %v773_v38 = vpop.permute.xlu1 %772  ;;  %v793_v33 = vpop.permute.xlu0 %792 }
 0x34b   : > { %v774_v57 = vsel %vm545_vm3, %v771_v17, %v773_v38  ;;  %v775_v49 = vsel %vm545_vm3, %v773_v38, %v771_v17 }
 0x34c   : > { %v776_v39 = vmul.f32 %v775_v49, %v1686_v60  ;;  %v777_v41 = vmul.f32 %v774_v57, %v1673_v56 }
 0x34e   : > { %v1108_v42 = vpack.c.bf16 %v776_v39, %v766_v53  ;;  %v785_v43 = vpop.permute.xlu1 %784  ;;  %v1106_v44 = vpack.c.bf16 %v777_v41, %v767_v58  ;;  %v803_v50 = vpop.permute.xlu0 %802 }
 0x34f   : > { %v786_v45 = vsel %vm566_vm5, %v783_v31, %v785_v43  ;;  %v787_v46 = vsel %vm566_vm5, %v785_v43, %v783_v31 }
 0x350   : > { %v788_v47 = vmul.f32 %v786_v45, %v1715_v18  ;;  %v789_v10 = vmul.f32 %v787_v46, %v1691_v0  ;;  %1107 = vmatprep.subr.bf16.mxu0 %v1106_v44 }
 0x351   : > { %1109 = vmatpush1.bf16.msra.mxu0 %v1108_v42 }
 0x352   : > { %v1112_v59 = vpack.c.bf16 %v788_v47, %v1769_v6  ;;  %v795_v60 = vpop.permute.xlu1 %794  ;;  %v1110_v56 = vpack.c.bf16 %v789_v10, %v739_v8  ;;  %v813_v1 = vpop.permute.xlu0 %812 }
 0x353   : > { %v796_v51 = vsel %vm585_vm6, %v793_v33, %v795_v60  ;;  %v797_v52 = vsel %vm585_vm6, %v795_v60, %v793_v33 }
 0x354   : > { %1111 = vmatprep.subr.bf16.mxu0 %v1110_v56  ;;  %v798_v32 = vmul.f32 %v796_v51, %v1728_v29  ;;  %v799_v61 = vmul.f32 %v797_v52, %v1731_v30 }
 0x355   : > { %1113 = vmatpush1.bf16.msra.mxu0 %v1112_v59 }
 0x356   : > { %v805_v54 = vpop.permute.xlu1 %804 }
 0x357   : > { %v806_v18 = vsel %vm604_vm7, %v803_v50, %v805_v54  ;;  %v807_v0 = vsel %vm604_vm7, %v805_v54, %v803_v50 }
 0x358   : > { %v808_v62 = vmul.f32 %v806_v18, %v1736_v35  ;;  %v809_v63 = vmul.f32 %v807_v0, %v1739_v36  ;;  %v822_v35 = vld [vmem:[%s1906_s6] sm:$0xf] }
 0x35a   : > { %v1116_v2 = vpack.c.bf16 %v808_v62, %v798_v32  ;;  %v815_v3 = vpop.permute.xlu1 %814  ;;  %v1114_v4 = vpack.c.bf16 %v809_v63, %v799_v61 }
 0x35b   : > { %v817_v5 = vsel %vm623_vm8, %v815_v3, %v813_v1  ;;  %v816_v6 = vsel %vm623_vm8, %v813_v1, %v815_v3 }
 0x35c   : > { %v819_v29 = vmul.f32 %v1755_v48, %v817_v5  ;;  %1115 = vmatprep.subr.bf16.mxu0 %v1114_v4  ;;  %v818_v30 = vmul.f32 %v1759_v55, %v816_v6 }
 0x35d   : > { %1117 = vmatpush1.bf16.msra.mxu0 %v1116_v2 }
 0x35e   : > { %866 = vmatprep.subr.mxu0 %v819_v29 }
 0x361   : > { %867 = vmatpush1.msra.mxu0 %v818_v30 }
 0x362   : > { %1062 = vmatmul.mubr.msk.f32.vlgmr.msra.gmra.mrb[2].mxu0 %vm663_vm9, %v822_v35 }
 0x363   : > { %v845_v36 = vpop.permute.xlu0 %844 }
 0x435   : > { %v916_v40 = vpop.f32.mrb[2].mxu0 }
 0x436   : > { %v917_v7 = vadd.f32 %v916_v40, %v845_v36  ;;  %v918_v8 = vpop.f32.mrb[3].mxu0 }
 0x437   : > { %v919_v48 = vadd.f32 %v918_v8, %v845_v36 }
 0x438   : > { %v921_v9 = vmax.f32 %v917_v7, 0.0 }
 0x439   : > { %v922_v55 = vmax.f32 %v919_v48, 0.0 }
 0x43b   : > { %v925_v11 = vcombine.low %v921_v9, %v922_v55 }
 0x43d   : > { %927 = vst [vmem:[%s364_s24] sm:$0xff] %v925_v11 }
 0x43e   : > { %1298 = shalt.err (!%p1295_p13)
}
 0x43f   : > { %s1299_s21 = scalar_lea.hbm %s1856_s17, 128  ;;  %s1303_s15 = scalar_lea.hbm %s1908_s8, 256 }
 0x440   : > { %p1300_p6 = scmp.ne.s32.totalorder %s1856_s17, %s1299_s21  ;;  %p1304_p5 = scmp.lt.u32.totalorder %s1856_s17, %s1908_s8 }
 0x441   : > { %p1305_p8 = scmp.lt.u32.totalorder %s1303_s15, %s1299_s21  ;;  %p1307_p0 = scmp.lt.u32.totalorder %s1299_s21, %s1856_s17 }
 0x442   : > { %p1301_p10 = pnand %p1300_p6, %p1922_p1 }
 0x443   : > { %p1306_p11 = por %p1305_p8, %p1304_p5 }
 0x444   : > { %p1302_p4 = pneg %p1301_p10 }
 0x445   : > { %p1308_p3 = por %p1307_p0, %p1306_p11 }
 0x447   : > { %p1309_p7 = pnand %p1308_p3, %p1302_p4 }
 0x449   : > { %1312 = shalt.err (!%p1309_p7)
}
 0x44a   : > { %1128 = dma.vmem_to_hbm [thread:$0]  (%p1922_p1), %s1858_s11, 128, %s1856_s17, %s929_s19  }
 0x44b PF: > { %s955_s26 = sand.u32 1, %s1343_s27   ;;  %p1923_p9 = scmp.ne.s32.totalorder %s1913_s12, 0 }
 0x44c   : > { %p1924_p12 = scmp.ge.s32.totalorder %s1355_s30, 2  ;;  %s956_s16 = scalar_lea.sflag [#allocation7], %s955_s26 }
 0x44e   : > { %p1142_p2 = pnand %p1924_p12, %p1923_p9 }
 0x450   : > { %1338 = dma.done.wait (!%p1142_p2), %s956_s16, 128  }
 0x451   : > { %1340 = vsyncadd (!%p1142_p2), %s956_s16, 4294967168  ;;  %p22_p13 = scmp.ge.s32.totalorder %s1528_s20, 4   ;;  %s1925_s27 = smov %s1347_s28 }
 0x452   : > { %s1926_s28 = smov %s1351_s29  ;;  %s1927_s29 = smov %s1544_s23 }
 0x453   : > { %s1928_s30 = smov %s1528_s20  ;;  %24 = sbr.rel (!%p22_p13) target bundleno = 6 (0x6), region = 108 }
 0x45a   :  { %961 = vsyncpa [#allocation6], 1 }
 0x45b   :  { %963 = vsyncpa [#allocation6 + $0x1], 1 }
 0x45c   :  { %964 = vsyncpa [#allocation9], 1 }
 0x45d   :  { %965 = vsyncpa [#allocation7], 1 }
 0x45e   :  { %967 = vsyncpa [#allocation7 + $0x1], 1 }

</bundles_post_ra>
